<compile_context>
chip_gen: v7x
topology: tpu7x:2x2x1
jax: 0.10.0
libtpu: 0.0.40
codegen_flags: <defaults>
</compile_context>

<pallas_src>
import jax
import jax.numpy as jnp
from jax.experimental import pallas as pl
from jax.experimental.pallas import tpu as pltpu


# ----------------------------------------------------------------------------
# Tiling helpers (generation aware)
# ----------------------------------------------------------------------------
def _largest_tile(n, unit, cap):
    """Largest multiple of `unit` that divides `n` and is <= cap (fallback: n)."""
    best = None
    t = unit
    limit = min(n, cap)
    while t <= limit:
        if n % t == 0:
            best = t
        t += unit
    return best if best is not None else n


def _dist_row_cap(M):
    """Cap on the query-row tile of the distance kernel.

    v7x has 64 MiB physical VMEM (vs 128 MiB on v5e/v6e), so use a smaller
    row cap there; also bound the double-buffered f32 [rows, M] output tile.
    """
    vmem_bytes = 128 * 1024 * 1024
    try:
        vmem_bytes = int(pltpu.get_tpu_info().vmem_capacity_bytes)
    except Exception:
        pass
    small_vmem = vmem_bytes <= 64 * 1024 * 1024           # v7x-class core
    cap = 512 if small_vmem else 1024
    budget = (6 if small_vmem else 12) * 1024 * 1024      # 2x f32 out buffers
    cap = min(cap, max(8, budget // (2 * 4 * max(M, 1))))
    return max(8, (cap // 8) * 8)


# ----------------------------------------------------------------------------
# Kernel 1: pairwise squared distances, VPU expansion, row-tiled.
#   d2[s, b, n, m] = sum_d (q[b, n, d] - p[s, b, d, m])^2
# ----------------------------------------------------------------------------
def _pdist2_kernel(q_ref, p_ref, o_ref):
    q = q_ref[...]                                         # [TILE_N, 3]
    p = p_ref[...]                                         # [3, M]
    acc = None
    for d in range(3):
        diff = q[:, d:d + 1] - p[d:d + 1, :]               # [TILE_N, M] (VPU)
        acc = diff * diff if acc is None else acc + diff * diff
    o_ref[...] = acc                                       # lane-dense store


def pairwise_dist2_pallas(query, refs):
    """query: [B, N, 3], refs: [S, B, 3, M] -> d2: [S, B, N, M]."""
    B, N, _ = query.shape
    S, _, _, M = refs.shape
    tile_n = _largest_tile(N, 8, _dist_row_cap(M))
    return pl.pallas_call(
        _pdist2_kernel,
        out_shape=jax.ShapeDtypeStruct((S, B, N, M), jnp.float32),
        grid=(S, B, N // tile_n),
        in_specs=[
            pl.BlockSpec((None, tile_n, 3), lambda s, b, n: (b, n, 0)),
            pl.BlockSpec((None, None, 3, M), lambda s, b, n: (s, b, 0, 0)),
        ],
        out_specs=pl.BlockSpec((None, None, tile_n, M),
                               lambda s, b, n: (s, b, n, 0)),
        compiler_params=pltpu.CompilerParams(
            dimension_semantics=("parallel", "parallel", "parallel")),
    )(query, refs)


def pairwise_dist2_ref(query, refs):
    diff = query[None, :, :, :, None] - refs[:, :, None, :, :]   # [S,B,N,3,M]
    return jnp.sum(diff * diff, axis=3)


# ----------------------------------------------------------------------------
# Kernel 2: 1x1-conv MLP (BN folded) + ReLU + channel max + softmax over k
#           + weighted sum over k.  Lane-dense output [B, 3+C, N].
# ----------------------------------------------------------------------------
def make_fusion_kernel(num_layers, k, tile_n):
    def kernel(*refs):
        feat_ref = refs[0]                                 # [Cin, k, TILE_N]
        fused_ref = refs[1]                                # [D,   k, TILE_N]
        wb = refs[2:-1]
        o_ref = refs[-1]                                   # [D, TILE_N]

        feat = feat_ref[...]                               # [Cin, k, TILE_N]
        # Lay the k neighbour slices side-by-side on the lane axis so the MLP
        # is one lane-dense matmul per layer ([Cout, Cin] @ [Cin, k*TILE_N]).
        x = jnp.concatenate([feat[:, kk, :] for kk in range(k)], axis=-1)
        for l in range(num_layers):
            W = wb[2 * l][...]                             # [Cout, Cin]
            b = wb[2 * l + 1][...]                         # [Cout, 1]
            x = jnp.dot(W, x, preferred_element_type=jnp.float32) + b
            x = jnp.maximum(x, 0.0)                        # ReLU

        # Channel max -> one score per (neighbour, point), still lane dense.
        s = jnp.max(x, axis=0, keepdims=True)              # [1, k*TILE_N]
        s_k = [s[:, kk * tile_n:(kk + 1) * tile_n] for kk in range(k)]

        # Softmax over k, done on [1, TILE_N] lane-dense chunks.
        m = s_k[0]
        for kk in range(1, k):
            m = jnp.maximum(m, s_k[kk])
        e_k = [jnp.exp(s_k[kk] - m) for kk in range(k)]
        denom = e_k[0]
        for kk in range(1, k):
            denom = denom + e_k[kk]
        inv = pl.reciprocal(denom, approx=True)            # [1, TILE_N] (EUP)

        # Weighted sum over k of fused values -> [D, TILE_N].
        fused = fused_ref[...]                             # [D, k, TILE_N]
        acc = (e_k[0] * inv) * fused[:, 0, :]
        for kk in range(1, k):
            acc = acc + (e_k[kk] * inv) * fused[:, kk, :]
        o_ref[...] = acc.astype(o_ref.dtype)
    return kernel


def fusion_pallas(feat4, fused4, Ws, bs):
    """feat4: [B, Cin, k, N], fused4: [B, D, k, N] -> out: [B, D, N]."""
    B, Cin, k, N = feat4.shape
    D = fused4.shape[1]
    num_layers = len(Ws)
    tile_n = _largest_tile(N, 128, 512)

    Wts = [jnp.transpose(W) for W in Ws]                   # [Cout, Cin]
    bcols = [b.reshape(-1, 1) for b in bs]                 # [Cout, 1]

    in_specs = [
        pl.BlockSpec((None, Cin, k, tile_n), lambda b, n: (b, 0, 0, n)),
        pl.BlockSpec((None, D, k, tile_n), lambda b, n: (b, 0, 0, n)),
    ]
    args = [feat4, fused4]
    for Wt, bc in zip(Wts, bcols):
        in_specs.append(pl.BlockSpec(Wt.shape, lambda b, n: (0, 0)))
        in_specs.append(pl.BlockSpec(bc.shape, lambda b, n: (0, 0)))
        args += [Wt, bc]

    return pl.pallas_call(
        make_fusion_kernel(num_layers, k, tile_n),
        out_shape=jax.ShapeDtypeStruct((B, D, N), jnp.float32),
        grid=(B, N // tile_n),
        in_specs=in_specs,
        out_specs=pl.BlockSpec((None, D, tile_n), lambda b, n: (b, 0, n)),
        compiler_params=pltpu.CompilerParams(
            dimension_semantics=("parallel", "parallel")),
    )(*args)


def fusion_ref(feat4, fused4, Ws, bs):
    x = feat4                                              # [B, Cin, k, N]
    for W, b in zip(Ws, bs):
        x = jnp.einsum('cd,bckn->bdkn', W, x) + b.reshape(1, -1, 1, 1)
        x = jnp.maximum(x, 0.0)
    s = jnp.max(x, axis=1)                                 # [B, k, N]
    w = jax.nn.softmax(s, axis=1)                          # softmax over k
    return jnp.sum(w[:, None, :, :] * fused4, axis=2)      # [B, D, N]


# ----------------------------------------------------------------------------
# Full forward (glue: random resampling, kNN top-k + gather in plain JAX)
# ----------------------------------------------------------------------------
def points_fusion_forward(Ws, bs, points1, points2, features1, features2,
                          k, t, perm_key, use_pallas=True):
    B, _, N = points1.shape
    C = features1.shape[1]
    N2 = int(N * t)
    N1 = N - N2
    k2 = int(k * t)
    k1 = k - k2

    # Per-batch random resampling: N1 points from points1 + N2 from points2.
    keys = jax.random.split(perm_key, 2 * B).reshape(B, 2, 2)
    perm = jax.vmap(jax.vmap(lambda kk: jax.random.permutation(kk, N)))(keys)
    ridx1 = perm[:, 0, :N1]                                # [B, N1]
    ridx2 = perm[:, 1, :N2]                                # [B, N2]
    take = jax.vmap(lambda p, idx: p[:, idx])
    new_points = jnp.concatenate(
        [take(points1, ridx1), take(points2, ridx2)], axis=-1)   # [B, 3, N]

    # One distance pallas_call for both reference clouds.
    q = jnp.transpose(new_points, (0, 2, 1))               # [B, N, 3]
    refs = jnp.stack([points1, points2], axis=0)           # [2, B, 3, N]
    d2 = (pairwise_dist2_pallas(q, refs) if use_pallas
          else pairwise_dist2_ref(q, refs))                # [2, B, N, M]

    groups = []
    for s, (pts_t, fts_t, kk) in enumerate(
            [(points1, features1, k1), (points2, features2, k2)]):
        _, idx = jax.lax.top_k(-d2[s], kk)                 # [B, N, kk] nearest
        p = jnp.transpose(pts_t, (0, 2, 1))                # [B, M, 3]
        f = jnp.transpose(fts_t, (0, 2, 1))                # [B, M, C]
        nn = jax.vmap(lambda a, i: a[i])(p, idx)           # [B, N, kk, 3]
        gf = jax.vmap(lambda a, i: a[i])(f, idx)           # [B, N, kk, C]
        resi = nn - q[:, :, None, :]
        dist = jnp.sqrt(jnp.sum(resi * resi, axis=-1, keepdims=True))
        nf = jnp.concatenate([resi, dist], axis=-1)        # [B, N, kk, 4]
        groups.append((nf, nn, gf))

    (nf1, gp1, gf1), (nf2, gp2, gf2) = groups
    feat = jnp.concatenate([nf1, nf2], axis=2)             # [B, N, k, 4]
    gpts = jnp.concatenate([gp1, gp2], axis=2)             # [B, N, k, 3]
    gfts = jnp.concatenate([gf1, gf2], axis=2)             # [B, N, k, C]
    fused_vals = jnp.concatenate([gpts, gfts], axis=-1)    # [B, N, k, 3+C]

    # TPU-friendly layouts: channels / neighbours on sublanes, points on lanes.
    feat4 = jnp.transpose(feat, (0, 3, 2, 1))              # [B, 4, k, N]
    fused4 = jnp.transpose(fused_vals, (0, 3, 2, 1))       # [B, 3+C, k, N]

    if use_pallas:
        return fusion_pallas(feat4, fused4, Ws, bs)        # [B, 3+C, N]
    return fusion_ref(feat4, fused4, Ws, bs)


def init_params(key, in_channels, out_channels, eps=1e-3):
    """Conv2d(1x1)+BatchNorm2d(eval)+ReLU stack, BN folded into W, b."""
    dims = [in_channels] + list(out_channels)
    Ws, bs = [], []
    for i in range(1, len(dims)):
        key, k1, k2, k3, k4, k5, k6 = jax.random.split(key, 7)
        cin, cout = dims[i - 1], dims[i]
        W = jax.random.normal(k1, (cin, cout), jnp.float32) / jnp.sqrt(cin)
        b = 0.1 * jax.random.normal(k2, (cout,), jnp.float32)
        gamma = 1.0 + 0.1 * jax.random.normal(k3, (cout,), jnp.float32)
        beta = 0.1 * jax.random.normal(k4, (cout,), jnp.float32)
        r_mean = 0.1 * jax.random.normal(k5, (cout,), jnp.float32)
        r_var = 0.5 + jax.random.uniform(k6, (cout,), jnp.float32)
        scale = gamma / jnp.sqrt(r_var + eps)
        Ws.append(W * scale[None, :])
        bs.append(((b - r_mean) * scale + beta).reshape(1, cout))
    return Ws, bs


if __name__ == "__main__":
    B, C, N, k = 2, 4, 128, 8
    t = 0.5
    key = jax.random.PRNGKey(0)
    kp1, kp2, kf1, kf2, kperm, kparam = jax.random.split(key, 6)

    points1 = jax.random.normal(kp1, (B, 3, N), jnp.float32)
    points2 = jax.random.normal(kp2, (B, 3, N), jnp.float32)
    features1 = jax.random.normal(kf1, (B, C, N), jnp.float32)
    features2 = jax.random.normal(kf2, (B, C, N), jnp.float32)

    # PointsFusion(in_channels=4, out_channels=[32, 64])
    Ws, bs = init_params(kparam, 4, [32, 64])

    out = points_fusion_forward(Ws, bs, points1, points2, features1, features2,
                                k, t, kperm, use_pallas=True)
    out = jax.block_until_ready(out)
    assert out.shape == (B, 3 + C, N), out.shape

    out_ref = points_fusion_forward(Ws, bs, points1, points2, features1,
                                    features2, k, t, kperm, use_pallas=False)
    out_ref = jax.block_until_ready(out_ref)
    err = float(jnp.max(jnp.abs(out - out_ref)))
    assert err < 5e-2, f"Pallas vs reference mismatch: max abs err = {err}"

    print("KERNEL_OK")
</pallas_src>

<mosaic_0001>
module attributes {stable_mosaic.version = 11 : i64} {
  func.func @_pdist2_kernel(%arg0: i32, %arg1: i32, %arg2: i32, %arg3: memref<1x128x3xf32, #tpu.memory_space<vmem>>, %arg4: memref<1x1x3x128xf32, #tpu.memory_space<vmem>>, %arg5: memref<1x1x128x128xf32, #tpu.memory_space<vmem>>) attributes {dimension_semantics = [#tpu.dimension_semantics<parallel>, #tpu.dimension_semantics<parallel>, #tpu.dimension_semantics<parallel>], iteration_bounds = array<i64: 2, 2, 1>, scalar_prefetch = 0 : i64, scratch_operands = 0 : i64, tpu.core_type = #tpu.core_type<tc>, window_params = [{transform_indices = @transform_0, window_bounds = array<i64: 1, 128, 3>}, {transform_indices = @transform_1, window_bounds = array<i64: 1, 1, 3, 128>}, {transform_indices = @transform_2, window_bounds = array<i64: 1, 1, 128, 128>}]} {
    %c0 = arith.constant 0 : index
    %c0_0 = arith.constant 0 : index
    %c0_1 = arith.constant 0 : index
    %0 = vector.load %arg3[%c0, %c0_0, %c0_1] : memref<1x128x3xf32, #tpu.memory_space<vmem>>, vector<1x128x3xf32>
    %1 = vector.shape_cast %0 : vector<1x128x3xf32> to vector<128x3xf32>
    %c0_2 = arith.constant 0 : index
    %c0_3 = arith.constant 0 : index
    %c0_4 = arith.constant 0 : index
    %c0_5 = arith.constant 0 : index
    %2 = vector.load %arg4[%c0_2, %c0_3, %c0_4, %c0_5] : memref<1x1x3x128xf32, #tpu.memory_space<vmem>>, vector<1x1x3x128xf32>
    %3 = vector.shape_cast %2 : vector<1x1x3x128xf32> to vector<3x128xf32>
    %4 = vector.extract_strided_slice %1 {offsets = [0, 0], sizes = [128, 1], strides = [1, 1]} : vector<128x3xf32> to vector<128x1xf32>
    %5 = vector.extract_strided_slice %3 {offsets = [0, 0], sizes = [1, 128], strides = [1, 1]} : vector<3x128xf32> to vector<1x128xf32>
    %6 = vector.broadcast %4 : vector<128x1xf32> to vector<128x128xf32>
    %7 = vector.broadcast %5 : vector<1x128xf32> to vector<128x128xf32>
    %8 = arith.subf %6, %7 : vector<128x128xf32>
    %9 = arith.mulf %8, %8 : vector<128x128xf32>
    %10 = vector.extract_strided_slice %1 {offsets = [0, 1], sizes = [128, 1], strides = [1, 1]} : vector<128x3xf32> to vector<128x1xf32>
    %11 = vector.extract_strided_slice %3 {offsets = [1, 0], sizes = [1, 128], strides = [1, 1]} : vector<3x128xf32> to vector<1x128xf32>
    %12 = vector.broadcast %10 : vector<128x1xf32> to vector<128x128xf32>
    %13 = vector.broadcast %11 : vector<1x128xf32> to vector<128x128xf32>
    %14 = arith.subf %12, %13 : vector<128x128xf32>
    %15 = arith.mulf %14, %14 : vector<128x128xf32>
    %16 = arith.addf %9, %15 : vector<128x128xf32>
    %17 = vector.extract_strided_slice %1 {offsets = [0, 2], sizes = [128, 1], strides = [1, 1]} : vector<128x3xf32> to vector<128x1xf32>
    %18 = vector.extract_strided_slice %3 {offsets = [2, 0], sizes = [1, 128], strides = [1, 1]} : vector<3x128xf32> to vector<1x128xf32>
    %19 = vector.broadcast %17 : vector<128x1xf32> to vector<128x128xf32>
    %20 = vector.broadcast %18 : vector<1x128xf32> to vector<128x128xf32>
    %21 = arith.subf %19, %20 : vector<128x128xf32>
    %22 = arith.mulf %21, %21 : vector<128x128xf32>
    %23 = arith.addf %16, %22 : vector<128x128xf32>
    %c0_6 = arith.constant 0 : index
    %c0_7 = arith.constant 0 : index
    %c0_8 = arith.constant 0 : index
    %c0_9 = arith.constant 0 : index
    %24 = vector.load %arg5[%c0_6, %c0_7, %c0_8, %c0_9] : memref<1x1x128x128xf32, #tpu.memory_space<vmem>>, vector<1x1x128x128xf32>
    %25 = vector.shape_cast %24 : vector<1x1x128x128xf32> to vector<128x128xf32>
    %26 = vector.shape_cast %23 : vector<128x128xf32> to vector<1x1x128x128xf32>
    tpu.vector_store %arg5[%c0_6, %c0_7, %c0_8, %c0_9], %26 {strides = array<i32>} : memref<1x1x128x128xf32, #tpu.memory_space<vmem>>, vector<1x1x128x128xf32>,
    return
  }
  func.func @transform_0(%arg0: i32, %arg1: i32, %arg2: i32) -> (i32, i32, i32) {
    %c0_i32 = arith.constant 0 : i32
    %c0_i32_0 = arith.constant 0 : i32
    return %arg1, %arg2, %c0_i32 : i32, i32, i32
  }
  func.func @transform_1(%arg0: i32, %arg1: i32, %arg2: i32) -> (i32, i32, i32, i32) {
    %c0_i32 = arith.constant 0 : i32
    %c0_i32_0 = arith.constant 0 : i32
    %c0_i32_1 = arith.constant 0 : i32
    return %arg0, %arg1, %c0_i32, %c0_i32_0 : i32, i32, i32, i32
  }
  func.func @transform_2(%arg0: i32, %arg1: i32, %arg2: i32) -> (i32, i32, i32, i32) {
    %c0_i32 = arith.constant 0 : i32
    %c0_i32_0 = arith.constant 0 : i32
    return %arg0, %arg1, %arg2, %c0_i32 : i32, i32, i32, i32
  }
}

</mosaic_0001>

<bundles_post_ra>
// kernel: tpu_custom_call.1
= control target key start
LH: loop header
LB: loop body
LE: loop exit
PB: predicated region body
PF: predicated region fallthrough
CT: control target
= control target key end

     0   :  { %7 = vsyncpa [#allocation3], 0  ;;  %s1224_s0 = inlined_call_operand.vmem [shape: f32[2,128,3], index: 0, kind: input, shape index: {}]   ;;  %s1225_s1 = inlined_call_operand.vmem [shape: f32[2,2,3,128], index: 1, kind: input, shape index: {}]   ;;  %s1226_s2 = inlined_call_operand.hbm [shape: f32[2,2,128,128], index: 2, kind: output, shape index: {}]  }
   0x1   :  { %9 = vsyncpa [#allocation3 + $0x1], 0  ;;  %s933_s9 = smov 0   ;;  %s935_s10 = smov 0  }
   0x2   :  { %s937_s11 = smov 0   ;;  %s939_s12 = smov 0  }
   0x3   :  { %s941_s13 = smov 0   ;;  %s943_s14 = smov 0  }
   0x4   :  { %s945_s15 = smov 0   ;;  %s947_s16 = smov 0  }
   0x5 LB: > { %s717_s17 = sadd.s32 4294967295, %s910_s16   ;;  %s718_s18 = sadd.s32 4294967294, %s910_s16   ;;  %s910_s16 = sphi %s947_s16, %s15_s16   ;;  %s906_s15 = sphi %s945_s15, %s1235_s15   ;;  %s902_s14 = sphi %s943_s14, %s1234_s14   ;;  %s898_s13 = sphi %s941_s13, %s1233_s13   ;;  %s894_s12 = sphi %s939_s12, %s1232_s12   ;;  %s890_s11 = sphi %s937_s11, %s1231_s11   ;;  %s886_s10 = sphi %s935_s10, %s1230_s10   ;;  %s882_s9 = sphi %s933_s9, %s1229_s9  }
   0x6   : > { %s30_s19 = sadd.s32 1, %s902_s14  ;;  %s34_s20 = sadd.s32 1, %s906_s15 }
   0x7   : > { %p32_p0 = scmp.ge.s32.totalorder %s30_s19, 2  ;;  %p111_p1 = scmp.ne.s32.totalorder %s890_s11, %s886_s10 }
   0x8   : > { %p112_p2 = scmp.eq.s32.totalorder %s717_s17, 3  ;;  %p117_p5 = scmp.ne.s32.totalorder %s886_s10, %s882_s9 }
   0x9   : > { %s1237_s19 = smov (%p32_p0, %s30_s19), 0  ;;  %s1239_s20 = smov (!%p32_p0, %s34_s20), %s906_s15 }
   0xa   : > { %s95_s21 = ssub.s32 %s902_s14, %s1237_s19  ;;  %p984_p3 = por %p112_p2, %p111_p1 }
   0xb   : > { %p36_p4 = scmp.ge.s32.totalorder %s1239_s20, 2  ;;  %p118_p6 = scmp.eq.s32.totalorder %s718_s18, 3 }
   0xc   : > { %p721_p7 = scmp.ge.s32.totalorder %s910_s16, 1  ;;  %p160_p9 = scmp.lt.s32.totalorder %s910_s16, 5 }
   0xd   : > { %s1241_s20 = smov (%p36_p4, %s1239_s20), 0  ;;  %p993_p8 = por %p118_p6, %p117_p5 }
   0xe   : > { %s94_s24 = ssub.s32 %s906_s15, %s1241_s20  ;;  %s101_s25 = sadd.s32 1, %s890_s11 }
   0xf   : > { %s96_s26 = sor.u32 %s95_s21, %s94_s24  ;;  %p161_p10 = pnand %p721_p7, %p160_p9 }
  0x10   : > { %p99_p11 = scmp.eq.s32.totalorder %s96_s26, 0  ;;  %p195_p12 = scmp.lt.s32.totalorder (!%p161_p10), %s894_s12, 1  ;;  %v912_v0 = vmov (!%p161_p10), 0   ;;  %v913_v17 = vmov (!%p161_p10), 1   ;;  %v914_v18 = vmov (!%p161_p10), 2   ;;  %v310_v19 = vlaneseq (!%p161_p10) }
  0x11   : > { %164 = sbr.rel (%p161_p10) target bundleno = 276 (0x114), region = 28  ;;  %811 = vset.pattern.permute.xlu1 (!%p161_p10), %v912_v0  ;;  %810 = vset.pattern.permute.xlu0 (!%p161_p10), %v912_v0  ;;  %p204_p13 = scmp.lt.s32.totalorder (!%p161_p10), %s898_s13, 1 }
  0x12   : > { %s1002_s27 = scalar_select %p99_p11, %s890_s11, %s101_s25  }
  0x13   : > { %v1015_v20 = vshrl.u32 (!%p161_p10), %v310_v19, 7  ;;  %s191_s24 = sand.u32 (!%p161_p10), 1, %s886_s10  }
  0x14   : > { %s722_s25 = sshll.u32 (!%p161_p10), %s191_s24, 7 }
  0x15   : > { %v312_v21 = vsub.s32 (!%p161_p10), 0, %v1015_v20  ;;  %v412_v48 = vsub.s32 (!%p161_p10), 1, %v1015_v20  ;;  %s1108_s26 = scalar_lea.vmem (!%p161_p10), [#allocation2], %s722_s25 }
  0x18   : > { %s1006_s28 = scalar_select %p195_p12, %s894_s12, 1 }
  0x19   : > { %s205_s5 = scalar_select %p204_p13, %s898_s13, 1 }
  0x1a   : > { %s733_s29 = sshll.u32 %s1006_s28, 7 }
  0x1b   : > { %s202_s4 = scalar_lea.vmem %s1224_s0, %s733_s29  ;;  %s725_s6 = sshll.u32 %s205_s5, 1 }
  0x1c   : > { %v215_v1 = vld [vmem:[%s202_s4 + $0x10] sm:$0xff]  ;;  %v213_v2 = vld [vmem:[%s202_s4] sm:$0xff]  ;;  %v216_v3 = vld [vmem:[%s202_s4 + $0x18] sm:$0xff]  ;;  %s209_s7 = sadd.s32 %s725_s6, %s1006_s28  ;;  %s728_s28 = sshll.u32 %s894_s12, 4 }
  0x1d   : > { %242 = vperm.xlu1 %811, %v215_v1   ;;  %232 = vperm.xlu0 %810, %v213_v2   ;;  %v214_v4 = vld [vmem:[%s202_s4 + $0x8] sm:$0xff]  ;;  %v217_v6 = vld [vmem:[%s202_s4 + $0x20] sm:$0xff]  ;;  %v220_v7 = vld [vmem:[%s202_s4 + $0x38] sm:$0xff]  ;;  %s726_s8 = sshll.u32 %s209_s7, 2  ;;  %s729_s29 = sshll.u32 %s898_s13, 5 }
  0x1e   : > { %v218_v5 = vld [vmem:[%s202_s4 + $0x28] sm:$0xff]  ;;  %v219_v8 = vld [vmem:[%s202_s4 + $0x30] sm:$0xff]  ;;  %v221_v10 = vld [vmem:[%s202_s4 + $0x40] sm:$0xff]  ;;  %s211_s21 = scalar_lea.vmem %s1225_s1, %s726_s8  ;;  %s609_s30 = sadd.s32 %s729_s29, %s728_s28 }
  0x1f   : > { %v222_v9 = vld [vmem:[%s202_s4 + $0x48] sm:$0xff]  ;;  %v224_v11 = vld [vmem:[%s202_s4 + $0x58] sm:$0xff]  ;;  %v223_v12 = vld [vmem:[%s202_s4 + $0x50] sm:$0xff]  ;;  %s730_s12 = sshll.u32 %s609_s30, 7  ;;  %s612_s13 = sshll.u32 %s1108_s26, 4  ;;  %s1166_s13 = int_to_ptr.vmem [resolvable:$true] %s612_s13 }
  0x20   : > { %v226_v13 = vld [vmem:[%s202_s4 + $0x68] sm:$0xff]  ;;  %v225_v14 = vld [vmem:[%s202_s4 + $0x60] sm:$0xff]  ;;  %v228_v15 = vld [vmem:[%s202_s4 + $0x78] sm:$0xff]  ;;  %s1164_s5 = scalar_lea.hbm %s1226_s2, %s730_s12  ;;  %s1172_s6 = scalar_lea.sflag [#allocation3], %s191_s24 }
  0x21   : > { %247 = vperm.xlu1 %811, %v216_v3   ;;  %237 = vperm.xlu0 %810, %v214_v4   ;;  %v227_v16 = vld [vmem:[%s202_s4 + $0x70] sm:$0xff]  ;;  %v1021_v22 = vld [vmem:[%s211_s21] sm:$0x7]  ;;  %s816_s7 = scalar_lea.vmem %s1166_s13, 2048  ;;  %s915_s8 = smov [#allocation2]  }
  0x22   : > { %v1024_v23 = vrot.slane %v1021_v22, %v312_v21  ;;  %v1052_v51 = vrot.slane %v1021_v22, %v412_v48  ;;  %p817_p0 = scmp.ne.s32.totalorder %s1166_s13, %s816_s7  ;;  %s820_s17 = sshll.u32 %s915_s8, 4  ;;  %s821_s17 = int_to_ptr.vmem [resolvable:$false] %s820_s17 }
  0x23   : > { %s822_s18 = scalar_lea.vmem %s821_s17, 4096  ;;  %p823_p4 = scmp.lt.s32.totalorder %s1166_s13, %s821_s17 }
  0x24   : > { %p818_p1 = pnand %p817_p0, %p984_p3  ;;  %p824_p5 = scmp.lt.s32.totalorder %s822_s18, %s816_s7 }
  0x25   : > { %257 = vperm.xlu1 %811, %v218_v5   ;;  %252 = vperm.xlu0 %810, %v217_v6  }
  0x26   : > { %p819_p2 = pneg %p818_p1  ;;  %p825_p6 = por %p824_p5, %p823_p4 }
  0x28   : > { %p826_p7 = pnand %p825_p6, %p819_p2 }
  0x29   : > { %267 = vperm.xlu1 %811, %v220_v7   ;;  %262 = vperm.xlu0 %810, %v219_v8  }
  0x2d   : > { %277 = vperm.xlu1 %811, %v222_v9   ;;  %272 = vperm.xlu0 %810, %v221_v10  }
  0x31   : > { %287 = vperm.xlu1 %811, %v224_v11   ;;  %282 = vperm.xlu0 %810, %v223_v12  }
  0x35   : > { %297 = vperm.xlu1 %811, %v226_v13   ;;  %292 = vperm.xlu0 %810, %v225_v14  }
  0x39   : > { %307 = vperm.xlu1 %811, %v228_v15   ;;  %302 = vperm.xlu0 %810, %v227_v16  }
  0x3d   : > { %813 = vset.pattern.permute.xlu1 %v913_v17  ;;  %812 = vset.pattern.permute.xlu0 %v913_v17 }
  0x3e   : > { %351 = vperm.xlu1 %813, %v214_v4   ;;  %347 = vperm.xlu0 %812, %v213_v2  }
  0x42   : > { %355 = vperm.xlu1 %813, %v215_v1   ;;  %359 = vperm.xlu0 %812, %v216_v3  }
  0x46   : > { %363 = vperm.xlu1 %813, %v217_v6   ;;  %367 = vperm.xlu0 %812, %v218_v5  }
  0x4a   : > { %371 = vperm.xlu1 %813, %v219_v8   ;;  %375 = vperm.xlu0 %812, %v220_v7  }
  0x4e   : > { %379 = vperm.xlu1 %813, %v221_v10   ;;  %383 = vperm.xlu0 %812, %v222_v9  }
  0x52   : > { %387 = vperm.xlu1 %813, %v223_v12   ;;  %391 = vperm.xlu0 %812, %v224_v11  }
  0x56   : > { %395 = vperm.xlu1 %813, %v225_v14   ;;  %399 = vperm.xlu0 %812, %v226_v13  }
  0x5a   : > { %403 = vperm.xlu1 %813, %v227_v16   ;;  %407 = vperm.xlu0 %812, %v228_v15  }
  0x5e   : > { %814 = vset.pattern.permute.xlu1 %v914_v18  ;;  %815 = vset.pattern.permute.xlu0 %v914_v18 }
  0x5f   : > { %463 = vperm.xlu1 %814, %v213_v2   ;;  %467 = vperm.xlu0 %815, %v214_v4  }
  0x63   : > { %471 = vperm.xlu1 %814, %v215_v1   ;;  %479 = vperm.xlu0 %815, %v217_v6  }
  0x67   : > { %475 = vperm.xlu1 %814, %v216_v3   ;;  %487 = vperm.xlu0 %815, %v219_v8  }
  0x6b   : > { %483 = vperm.xlu1 %814, %v218_v5   ;;  %495 = vperm.xlu0 %815, %v221_v10  }
  0x6f   : > { %491 = vperm.xlu1 %814, %v220_v7   ;;  %503 = vperm.xlu0 %815, %v223_v12  }
  0x73   : > { %499 = vperm.xlu1 %814, %v222_v9   ;;  %511 = vperm.xlu0 %815, %v225_v14  }
  0x77   : > { %507 = vperm.xlu1 %814, %v224_v11   ;;  %519 = vperm.xlu0 %815, %v227_v16  }
  0x7b   : > { %515 = vperm.xlu1 %814, %v226_v13  }
  0x7f   : > { %523 = vperm.xlu1 %814, %v228_v15  }
  0x9c   : > { %v243_v24 = vpop.permute.xlu1 %242  ;;  %v1026_v25 = vpop.permute.xlu0 %232 }
  0x9d   : > { %v316_v26 = vsub.f32 %v243_v24, %v1024_v23 }
  0x9f   : > { %v332_v56 = vmul.f32 %v316_v26, %v316_v26 }
  0xa0   : > { %v248_v27 = vpop.permute.xlu1 %247  ;;  %v1029_v28 = vpop.permute.xlu0 %237 }
  0xa1   : > { %v317_v29 = vsub.f32 %v248_v27, %v1024_v23 }
  0xa3   : > { %v333_v57 = vmul.f32 %v317_v29, %v317_v29 }
  0xa4   : > { %v258_v30 = vpop.permute.xlu1 %257  ;;  %v1032_v31 = vpop.permute.xlu0 %252 }
  0xa5   : > { %v319_v32 = vsub.f32 %v258_v30, %v1024_v23  ;;  %v528_v30 = vsub.s32 2, %v1015_v20  ;;  %v314_v20 = vsub.f32 %v1026_v25, %v1024_v23 }
  0xa7   : > { %v335_v1 = vmul.f32 %v319_v32, %v319_v32 }
  0xa8   : > { %v268_v33 = vpop.permute.xlu1 %267  ;;  %v1035_v34 = vpop.permute.xlu0 %262 }
  0xa9   : > { %v321_v35 = vsub.f32 %v268_v33, %v1024_v23 }
  0xab   : > { %v337_v7 = vmul.f32 %v321_v35, %v321_v35 }
  0xac   : > { %v278_v36 = vpop.permute.xlu1 %277  ;;  %v1038_v37 = vpop.permute.xlu0 %272 }
  0xad   : > { %v323_v38 = vsub.f32 %v278_v36, %v1024_v23 }
  0xaf   : > { %v339_v13 = vmul.f32 %v323_v38, %v323_v38 }
  0xb0   : > { %v288_v39 = vpop.permute.xlu1 %287  ;;  %v1041_v40 = vpop.permute.xlu0 %282 }
  0xb1   : > { %v325_v41 = vsub.f32 %v288_v39, %v1024_v23 }
  0xb3   : > { %v341_v19 = vmul.f32 %v325_v41, %v325_v41  ;;  %v315_v41 = vsub.f32 %v1029_v28, %v1024_v23  ;;  %v318_v28 = vsub.f32 %v1032_v31, %v1024_v23  ;;  %v320_v31 = vsub.f32 %v1035_v34, %v1024_v23 }
  0xb4   : > { %v298_v42 = vpop.permute.xlu1 %297  ;;  %v1044_v43 = vpop.permute.xlu0 %292 }
  0xb5   : > { %v327_v44 = vsub.f32 %v298_v42, %v1024_v23 }
  0xb7   : > { %v343_v32 = vmul.f32 %v327_v44, %v327_v44  ;;  %v1090_v44 = vrot.slane %v1021_v22, %v528_v30 }
  0xb8   : > { %v308_v45 = vpop.permute.xlu1 %307  ;;  %v1047_v46 = vpop.permute.xlu0 %302 }
  0xb9   : > { %v329_v47 = vsub.f32 %v308_v45, %v1024_v23 }
  0xbb   : > { %v345_v48 = vmul.f32 %v329_v47, %v329_v47 }
  0xbd   : > { %v352_v49 = vpop.permute.xlu1 %351  ;;  %v348_v50 = vpop.permute.xlu0 %347 }
  0xbe   : > { %v415_v33 = vsub.f32 %v352_v49, %v1052_v51  ;;  %v414_v36 = vsub.f32 %v348_v50, %v1052_v51 }
  0xc0   : > { %v431_v49 = vmul.f32 %v415_v33, %v415_v33 }
  0xc1   : > { %v356_v52 = vpop.permute.xlu1 %355  ;;  %v360_v53 = vpop.permute.xlu0 %359 }
  0xc2   : > { %v416_v54 = vsub.f32 %v356_v52, %v1052_v51  ;;  %v417_v55 = vsub.f32 %v360_v53, %v1052_v51  ;;  %v430_v53 = vmul.f32 %v414_v36, %v414_v36 }
  0xc4   : > { %v432_v58 = vmul.f32 %v416_v54, %v416_v54  ;;  %v433_v59 = vmul.f32 %v417_v55, %v417_v55  ;;  %v331_v54 = vmul.f32 %v315_v41, %v315_v41 }
  0xc5   : > { %v364_v60 = vpop.permute.xlu1 %363  ;;  %v368_v61 = vpop.permute.xlu0 %367 }
  0xc6   : > { %v1056_v62 = vadd.f32 %v432_v58, %v332_v56  ;;  %v1058_v63 = vadd.f32 %v433_v59, %v333_v57  ;;  %v419_v0 = vsub.f32 %v368_v61, %v1052_v51  ;;  %v418_v50 = vsub.f32 %v364_v60, %v1052_v51 }
  0xc7   : > { %v330_v58 = vmul.f32 %v314_v20, %v314_v20  ;;  %v447_v47 = vadd.f32 %v431_v49, %v331_v54 }
  0xc8   : > { %v435_v2 = vmul.f32 %v419_v0, %v419_v0  ;;  %v434_v59 = vmul.f32 %v418_v50, %v418_v50 }
  0xc9   : > { %v372_v3 = vpop.permute.xlu1 %371  ;;  %v376_v4 = vpop.permute.xlu0 %375  ;;  %v446_v60 = vadd.f32 %v430_v53, %v330_v58 }
  0xca   : > { %v1061_v5 = vadd.f32 %v435_v2, %v335_v1  ;;  %v421_v6 = vsub.f32 %v376_v4, %v1052_v51  ;;  %v420_v61 = vsub.f32 %v372_v3, %v1052_v51  ;;  %v334_v2 = vmul.f32 %v318_v28, %v318_v28 }
  0xcc   : > { %v437_v8 = vmul.f32 %v421_v6, %v421_v6 }
  0xcd   : > { %v380_v9 = vpop.permute.xlu1 %379  ;;  %v384_v10 = vpop.permute.xlu0 %383 }
  0xce   : > { %v1064_v11 = vadd.f32 %v437_v8, %v337_v7  ;;  %v423_v12 = vsub.f32 %v384_v10, %v1052_v51 }
  0xd0   : > { %v439_v14 = vmul.f32 %v423_v12, %v423_v12 }
  0xd1   : > { %v1067_v15 = vpop.permute.xlu1 %387  ;;  %v392_v16 = vpop.permute.xlu0 %391 }
  0xd2   : > { %v1069_v17 = vadd.f32 %v439_v14, %v339_v13  ;;  %v425_v18 = vsub.f32 %v392_v16, %v1052_v51  ;;  %v450_v13 = vadd.f32 %v434_v59, %v334_v2  ;;  %v436_v14 = vmul.f32 %v420_v61, %v420_v61 }
  0xd3   : > { %v422_v16 = vsub.f32 %v380_v9, %v1052_v51  ;;  %v424_v33 = vsub.f32 %v1067_v15, %v1052_v51 }
  0xd4   : > { %v441_v21 = vmul.f32 %v425_v18, %v425_v18  ;;  %v336_v18 = vmul.f32 %v320_v31, %v320_v31 }
  0xd5   : > { %v1072_v24 = vpop.permute.xlu1 %395  ;;  %v400_v26 = vpop.permute.xlu0 %399  ;;  %v438_v36 = vmul.f32 %v422_v16, %v422_v16 }
  0xd6   : > { %v1074_v27 = vadd.f32 %v441_v21, %v341_v19  ;;  %v427_v29 = vsub.f32 %v400_v26, %v1052_v51  ;;  %v322_v19 = vsub.f32 %v1038_v37, %v1024_v23  ;;  %v426_v54 = vsub.f32 %v1072_v24, %v1052_v51 }
  0xd8   : > { %v443_v35 = vmul.f32 %v427_v29, %v427_v29  ;;  %v338_v41 = vmul.f32 %v322_v19, %v322_v19 }
  0xd9   : > { %v1080_v38 = vpop.permute.xlu1 %403  ;;  %v408_v39 = vpop.permute.xlu0 %407 }
  0xda   : > { %v1084_v42 = vadd.f32 %v443_v35, %v343_v32  ;;  %v429_v45 = vsub.f32 %v408_v39, %v1052_v51  ;;  %v452_v35 = vadd.f32 %v436_v14, %v336_v18  ;;  %v454_v53 = vadd.f32 %v438_v36, %v338_v41 }
  0xdb   : > { %v428_v61 = vsub.f32 %v1080_v38, %v1052_v51 }
  0xdc   : > { %v445_v52 = vmul.f32 %v429_v45, %v429_v45 }
  0xdd   : > { %v444_v38 = vmul.f32 %v428_v61, %v428_v61 }
  0xde   : > { %v1096_v55 = vadd.f32 %v445_v52, %v345_v48  ;;  %v464_v56 = vpop.permute.xlu1 %463  ;;  %v468_v57 = vpop.permute.xlu0 %467  ;;  %v440_v52 = vmul.f32 %v424_v33, %v424_v33 }
  0xdf   : > { %v530_v22 = vsub.f32 %v464_v56, %v1090_v44  ;;  %v531_v25 = vsub.f32 %v468_v57, %v1090_v44 }
  0xe1   : > { %v546_v0 = vmul.f32 %v530_v22, %v530_v22  ;;  %v547_v1 = vmul.f32 %v531_v25, %v531_v25 }
  0xe2   : > { %v472_v4 = vpop.permute.xlu1 %471  ;;  %v480_v6 = vpop.permute.xlu0 %479 }
  0xe3   : > { %v562_v7 = vadd.f32 %v546_v0, %v446_v60  ;;  %v563_v8 = vadd.f32 %v547_v1, %v447_v47  ;;  %v532_v10 = vsub.f32 %v472_v4, %v1090_v44  ;;  %v534_v12 = vsub.f32 %v480_v6, %v1090_v44 }
  0xe4   : > { %v442_v60 = vmul.f32 %v426_v54, %v426_v54 }
  0xe5   : > { %578 = vst [vmem:[%s1108_s26] sm:$0xff] %v562_v7  ;;  %579 = vst [vmem:[%s1108_s26 + $0x8] sm:$0xff] %v563_v8  ;;  %v548_v34 = vmul.f32 %v532_v10, %v532_v10  ;;  %v550_v3 = vmul.f32 %v534_v12, %v534_v12 }
  0xe6   : > { %v476_v21 = vpop.permute.xlu1 %475  ;;  %v488_v26 = vpop.permute.xlu0 %487 }
  0xe7   : > { %v564_v29 = vadd.f32 %v548_v34, %v1056_v62  ;;  %v566_v30 = vadd.f32 %v550_v3, %v450_v13  ;;  %v533_v9 = vsub.f32 %v476_v21, %v1090_v44  ;;  %v536_v32 = vsub.f32 %v488_v26, %v1090_v44 }
  0xe8   : > { %v324_v62 = vsub.f32 %v1041_v40, %v1024_v23 }
  0xe9   : > { %580 = vst [vmem:[%s1108_s26 + $0x10] sm:$0xff] %v564_v29  ;;  %582 = vst [vmem:[%s1108_s26 + $0x20] sm:$0xff] %v566_v30  ;;  %v549_v39 = vmul.f32 %v533_v9, %v533_v9  ;;  %v552_v37 = vmul.f32 %v536_v32, %v536_v32 }
  0xea   : > { %v484_v45 = vpop.permute.xlu1 %483  ;;  %v496_v20 = vpop.permute.xlu0 %495  ;;  %v340_v56 = vmul.f32 %v324_v62, %v324_v62 }
  0xeb   : > { %v565_v48 = vadd.f32 %v549_v39, %v1058_v63  ;;  %v568_v49 = vadd.f32 %v552_v37, %v452_v35  ;;  %v535_v50 = vsub.f32 %v484_v45, %v1090_v44  ;;  %v538_v15 = vsub.f32 %v496_v20, %v1090_v44 }
  0xec   : > { %v326_v63 = vsub.f32 %v1044_v43, %v1024_v23  ;;  %v456_v24 = vadd.f32 %v440_v52, %v340_v56 }
  0xed   : > { %581 = vst [vmem:[%s1108_s26 + $0x18] sm:$0xff] %v565_v48  ;;  %584 = vst [vmem:[%s1108_s26 + $0x30] sm:$0xff] %v568_v49  ;;  %v551_v28 = vmul.f32 %v535_v50, %v535_v50  ;;  %v554_v40 = vmul.f32 %v538_v15, %v538_v15 }
  0xee   : > { %v492_v57 = vpop.permute.xlu1 %491  ;;  %v504_v58 = vpop.permute.xlu0 %503  ;;  %v342_v1 = vmul.f32 %v326_v63, %v326_v63 }
  0xef   : > { %v567_v22 = vadd.f32 %v551_v28, %v1061_v5  ;;  %v570_v25 = vadd.f32 %v554_v40, %v454_v53  ;;  %v537_v47 = vsub.f32 %v492_v57, %v1090_v44  ;;  %v540_v59 = vsub.f32 %v504_v58, %v1090_v44 }
  0xf0   : > { %v328_v5 = vsub.f32 %v1047_v46, %v1024_v23  ;;  %v458_v51 = vadd.f32 %v442_v60, %v342_v1 }
  0xf1   : > { %583 = vst [vmem:[%s1108_s26 + $0x28] sm:$0xff] %v567_v22  ;;  %586 = vst [vmem:[%s1108_s26 + $0x40] sm:$0xff] %v570_v25  ;;  %v553_v0 = vmul.f32 %v537_v47, %v537_v47  ;;  %v556_v43 = vmul.f32 %v540_v59, %v540_v59 }
  0xf2   : > { %v500_v2 = vpop.permute.xlu1 %499  ;;  %v512_v31 = vpop.permute.xlu0 %511  ;;  %v344_v23 = vmul.f32 %v328_v5, %v328_v5 }
  0xf3   : > { %v569_v4 = vadd.f32 %v553_v0, %v1064_v11  ;;  %v572_v6 = vadd.f32 %v556_v43, %v456_v24  ;;  %v539_v7 = vsub.f32 %v500_v2, %v1090_v44  ;;  %v542_v8 = vsub.f32 %v512_v31, %v1090_v44 }
  0xf4   : > { %v460_v3 = vadd.f32 %v444_v38, %v344_v23 }
  0xf5   : > { %585 = vst [vmem:[%s1108_s26 + $0x38] sm:$0xff] %v569_v4  ;;  %588 = vst [vmem:[%s1108_s26 + $0x50] sm:$0xff] %v572_v6  ;;  %v555_v10 = vmul.f32 %v539_v7, %v539_v7  ;;  %v558_v12 = vmul.f32 %v542_v8, %v542_v8 }
  0xf6   : > { %v508_v46 = vpop.permute.xlu1 %507  ;;  %v520_v13 = vpop.permute.xlu0 %519 }
  0xf7   : > { %v571_v11 = vadd.f32 %v555_v10, %v1069_v17  ;;  %v574_v14 = vadd.f32 %v558_v12, %v458_v51  ;;  %v541_v16 = vsub.f32 %v508_v46, %v1090_v44  ;;  %v544_v34 = vsub.f32 %v520_v13, %v1090_v44 }
  0xf9   : > { %587 = vst [vmem:[%s1108_s26 + $0x48] sm:$0xff] %v571_v11  ;;  %590 = vst [vmem:[%s1108_s26 + $0x60] sm:$0xff] %v574_v14  ;;  %v557_v18 = vmul.f32 %v541_v16, %v541_v16  ;;  %v560_v19 = vmul.f32 %v544_v34, %v544_v34 }
  0xfa   : > { %v516_v21 = vpop.permute.xlu1 %515 }
  0xfb   : > { %v573_v26 = vadd.f32 %v557_v18, %v1074_v27  ;;  %v576_v17 = vadd.f32 %v560_v19, %v460_v3  ;;  %v543_v29 = vsub.f32 %v516_v21, %v1090_v44 }
  0xfd   : > { %589 = vst [vmem:[%s1108_s26 + $0x58] sm:$0xff] %v573_v26  ;;  %592 = vst [vmem:[%s1108_s26 + $0x70] sm:$0xff] %v576_v17  ;;  %v559_v30 = vmul.f32 %v543_v29, %v543_v29 }
  0xfe   : > { %v524_v9 = vpop.permute.xlu1 %523 }
  0xff   : > { %v575_v32 = vadd.f32 %v559_v30, %v1084_v42  ;;  %v545_v33 = vsub.f32 %v524_v9, %v1090_v44 }
 0x101   : > { %591 = vst [vmem:[%s1108_s26 + $0x68] sm:$0xff] %v575_v32  ;;  %v561_v35 = vmul.f32 %v545_v33, %v545_v33 }
 0x103   : > { %v577_v27 = vadd.f32 %v561_v35, %v1096_v55 }
 0x105   : > { %593 = vst [vmem:[%s1108_s26 + $0x78] sm:$0xff] %v577_v27 }
 0x106   : > { %829 = shalt.err (!%p826_p7)
}
 0x107   : > { %s830_s21 = scalar_lea.hbm %s1164_s5, 2048  ;;  %s834_s26 = scalar_lea.hbm %s1226_s2, 8192 }
 0x108   : > { %p831_p9 = scmp.ne.s32.totalorder %s1164_s5, %s830_s21  ;;  %p835_p12 = scmp.lt.u32.totalorder %s1164_s5, %s1226_s2 }
 0x109   : > { %p836_p13 = scmp.lt.u32.totalorder %s834_s26, %s830_s21  ;;  %p838_p1 = scmp.lt.u32.totalorder %s830_s21, %s1164_s5 }
 0x10a   : > { %p832_p10 = pnand %p831_p9, %p984_p3 }
 0x10b   : > { %p837_p0 = por %p836_p13, %p835_p12 }
 0x10c   : > { %p833_p11 = pneg %p832_p10 }
 0x10d   : > { %p839_p2 = por %p838_p1, %p837_p0 }
 0x10f   : > { %p840_p4 = pnand %p839_p2, %p833_p11 }
 0x111   : > { %843 = shalt.err (!%p840_p4)
}
 0x112   : > { %s916_s30 = smov 128   ;;  %s917_s12 = smov 8  }
 0x113   : > { %734 = dma.vmem_to_hbm [thread:$0]  (%p984_p3), %s1166_s13, 2048, %s1164_s5, %s1172_s6, %s916_s30, %s916_s30, %s917_s12  }
 0x114 PF: > { %p740_p5 = scmp.ge.s32.totalorder %s910_s16, 2  ;;  %s627_s3 = sand.u32 1, %s882_s9  }
 0x115   : > { %s628_s4 = scalar_lea.sflag [#allocation3], %s627_s3 }
 0x116   : > { %p737_p6 = pnand %p740_p5, %p993_p8 }
 0x118   : > { %877 = dma.done.wait (!%p737_p6), %s628_s4, 2048  }
 0x119   : > { %879 = vsyncadd (!%p737_p6), %s628_s4, 4294965248  ;;  %s15_s16 = sadd.s32 1, %s910_s16   ;;  %s1229_s9 = smov %s886_s10 }
 0x11a   : > { %p12_p7 = scmp.ge.s32.totalorder %s15_s16, 6   ;;  %s1230_s10 = smov %s890_s11 }
 0x11b   : > { %s1231_s11 = smov %s1002_s27  ;;  %s1232_s12 = smov %s902_s14 }
 0x11c   : > { %s1233_s13 = smov %s906_s15  ;;  %s1234_s14 = smov %s1237_s19 }
 0x11d   : > { %s1235_s15 = smov %s1241_s20  ;;  %14 = sbr.rel (!%p12_p7) target bundleno = 5 (0x5), region = 66 }
 0x124   :  { %633 = vsyncpa [#allocation3], 1 }
 0x125   :  { %635 = vsyncpa [#allocation3 + $0x1], 1 }

</bundles_post_ra>
